<compile_context>
chip_gen: v6e
topology: v6e:2x2x1
jax: 0.10.0
libtpu: 0.0.40
codegen_flags: <defaults>
</compile_context>

<pallas_src>
import functools

import jax
import jax.numpy as jnp
from jax import lax
from jax.experimental import pallas as pl
from jax.experimental.pallas import tpu as pltpu


def _label_smoothing_ce_kernel(x_ref, tgt_ref, out_ref, acc_ref, *,
                               eps, num_classes, n_rows, tile_n):
    i = pl.program_id(0)

    @pl.when(i == 0)
    def _init():
        acc_ref[...] = jnp.zeros_like(acc_ref)

    x = x_ref[...].astype(jnp.float32)                       # (TILE_N, C)
    tn, c = x.shape

    # Stabilized logsumexp along the class (lane) axis.
    m = jnp.max(x, axis=-1, keepdims=True)                   # (TILE_N, 1)
    shifted = x - m
    lse = jnp.log(jnp.sum(jnp.exp(shifted), axis=-1, keepdims=True))  # (TILE_N, 1)

    # sum_c log_softmax = sum_c shifted - C * lse   (log_preds never built)
    row_sum = jnp.sum(shifted, axis=-1, keepdims=True) - c * lse      # (TILE_N, 1)

    # log_softmax[i, target[i]] = shifted[i, target[i]] - lse[i]
    col_ids = lax.broadcasted_iota(jnp.int32, (tn, c), 1)
    tgt = tgt_ref[...]                                        # (TILE_N, 1) int32
    tgt_shift = jnp.sum(jnp.where(col_ids == tgt, shifted, 0.0),
                        axis=-1, keepdims=True)               # (TILE_N, 1)
    tgt_logp = tgt_shift - lse

    # Fused per-row combine -> a single cross-sublane reduction per tile.
    partial = (-(eps / num_classes)) * row_sum - (1.0 - eps) * tgt_logp

    # Mask rows past the true batch size (last partial tile reads junk).
    row_ids = i * tile_n + lax.broadcasted_iota(jnp.int32, (tn, 1), 0)
    partial = jnp.where(row_ids < n_rows, partial, 0.0)

    acc_ref[...] += jnp.sum(partial, axis=0, keepdims=True)   # (1, 1)

    @pl.when(i == pl.num_programs(0) - 1)
    def _finalize():
        out_ref[...] = acc_ref[...] * (1.0 / n_rows)


def _round_up(x, m):
    return (x + m - 1) // m * m


def label_smoothing_cross_entropy(output, target, eps=0.1, tile_n=None):
    """output: (N, C) float (any dtype), target: (N,) int. reduction='mean'."""
    n, c = output.shape
    if tile_n is None:
        itemsize = jnp.dtype(output.dtype).itemsize
        # ~2 MiB per input tile buffer; Pallas double-buffers on top of this,
        # which stays comfortably inside scoped VMEM on v5e/v6e/v7x.
        rows = max(8, (2 * 1024 * 1024) // max(c * itemsize, 1))
        rows = min(rows, 1024)
        tile_n = min(_round_up(n, 8), _round_up(rows, 8))
    tile_n = int(tile_n)
    num_tiles = pl.cdiv(n, tile_n)

    tgt2d = target.astype(jnp.int32).reshape(n, 1)

    kernel = functools.partial(
        _label_smoothing_ce_kernel,
        eps=float(eps), num_classes=c, n_rows=n, tile_n=tile_n)

    out = pl.pallas_call(
        kernel,
        out_shape=jax.ShapeDtypeStruct((1, 1), jnp.float32),
        grid_spec=pltpu.PrefetchScalarGridSpec(
            num_scalar_prefetch=0,
            grid=(num_tiles,),
            in_specs=[
                pl.BlockSpec((tile_n, c), lambda i: (i, 0)),
                pl.BlockSpec((tile_n, 1), lambda i: (i, 0)),
            ],
            out_specs=pl.BlockSpec((1, 1), lambda i: (0, 0)),
            scratch_shapes=[pltpu.VMEM((1, 1), jnp.float32)],
        ),
        compiler_params=pltpu.CompilerParams(
            dimension_semantics=("arbitrary",),
        ),
    )(output, tgt2d)      # NOTE: native dtype, no host-side f32 cast
    return out[0, 0]


def _reference(output, target, eps=0.1):
    # pure-JAX reference for validation
    log_preds = jax.nn.log_softmax(output.astype(jnp.float32), axis=-1)
    c = output.shape[-1]
    loss = jnp.mean(-jnp.sum(log_preds, axis=-1))
    nll = jnp.mean(-jnp.take_along_axis(log_preds, target[:, None], axis=-1)[:, 0])
    return loss * eps / c + (1.0 - eps) * nll


if __name__ == "__main__":
    key = jax.random.PRNGKey(0)

    # Case 1: f32 input, tile-aligned batch.
    k1, k2, k3, k4 = jax.random.split(key, 4)
    N, C = 16, 128
    out_f32 = jax.random.normal(k1, (N, C), dtype=jnp.float32)
    tgt1 = jax.random.randint(k2, (N,), 0, C, dtype=jnp.int32)
    res1 = jax.block_until_ready(label_smoothing_cross_entropy(out_f32, tgt1, eps=0.1))
    ref1 = _reference(out_f32, tgt1, eps=0.1)
    assert jnp.allclose(res1, ref1, atol=1e-5, rtol=1e-5), (res1, ref1)

    # Case 2: bf16 input (native dtype streamed) + batch not a multiple of the
    # tile size (exercises the in-kernel row mask).
    N2, C2 = 13, 128
    out_bf16 = jax.random.normal(k3, (N2, C2), dtype=jnp.float32).astype(jnp.bfloat16)
    tgt2 = jax.random.randint(k4, (N2,), 0, C2, dtype=jnp.int32)
    res2 = jax.block_until_ready(label_smoothing_cross_entropy(out_bf16, tgt2, eps=0.1))
    ref2 = _reference(out_bf16, tgt2, eps=0.1)
    assert jnp.allclose(res2, ref2, atol=1e-3, rtol=1e-3), (res2, ref2)

    print("KERNEL_OK")
</pallas_src>

<mosaic_0001>
module attributes {stable_mosaic.version = 11 : i64} {
  func.func @_label_smoothing_ce_kernel(%arg0: i32, %arg1: memref<16x128xf32, #tpu.memory_space<vmem>>, %arg2: memref<16x1xi32, #tpu.memory_space<vmem>>, %arg3: memref<1x1xf32, #tpu.memory_space<vmem>>, %arg4: memref<1x1xf32, #tpu.memory_space<vmem>>) attributes {dimension_semantics = [#tpu.dimension_semantics<arbitrary>], iteration_bounds = array<i64: 1>, scalar_prefetch = 0 : i64, scratch_operands = 1 : i64, tpu.core_type = #tpu.core_type<tc>, window_params = [{transform_indices = @transform_0, window_bounds = array<i64: 16, 128>}, {transform_indices = @transform_1, window_bounds = array<i64: 16, 1>}, {pipeline_mode = #tpu.pipeline_mode<synchronous>, transform_indices = @transform_2, window_bounds = array<i64: 1, 1>}]} {
    %c0_i32 = arith.constant 0 : i32
    %0 = arith.cmpi eq, %arg0, %c0_i32 : i32
    %1 = arith.extui %0 : i1 to i32
    %c0_i32_0 = arith.constant 0 : i32
    %2 = arith.cmpi ne, %1, %c0_i32_0 : i32
    scf.if %2 {
      %cst_20 = arith.constant 0.000000e+00 : f32
      %47 = vector.broadcast %cst_20 : f32 to vector<1x1xf32>
      %c0_21 = arith.constant 0 : index
      %c0_22 = arith.constant 0 : index
      %48 = vector.load %arg4[%c0_21, %c0_22] : memref<1x1xf32, #tpu.memory_space<vmem>>, vector<1x1xf32>
      tpu.vector_store %arg4[%c0_21, %c0_22], %47 {strides = array<i32>} : memref<1x1xf32, #tpu.memory_space<vmem>>, vector<1x1xf32>,
    } else {
    }
    %c0 = arith.constant 0 : index
    %c0_1 = arith.constant 0 : index
    %3 = vector.load %arg1[%c0, %c0_1] : memref<16x128xf32, #tpu.memory_space<vmem>>, vector<16x128xf32>
    %cst = arith.constant dense<0xFF800000> : vector<16xf32>
    %4 = vector.multi_reduction <maximumf>, %3, %cst [1] : vector<16x128xf32> to vector<16xf32>
    %5 = vector.shape_cast %4 : vector<16xf32> to vector<16x1xf32>
    %6 = vector.broadcast %5 : vector<16x1xf32> to vector<16x128xf32>
    %7 = arith.subf %3, %6 : vector<16x128xf32>
    %8 = math.exp %7 : vector<16x128xf32>
    %cst_2 = arith.constant dense<0.000000e+00> : vector<16xf32>
    %9 = vector.multi_reduction <add>, %8, %cst_2 [1] : vector<16x128xf32> to vector<16xf32>
    %10 = vector.shape_cast %9 : vector<16xf32> to vector<16x1xf32>
    %11 = math.log %10 : vector<16x1xf32>
    %cst_3 = arith.constant dense<0.000000e+00> : vector<16xf32>
    %12 = vector.multi_reduction <add>, %7, %cst_3 [1] : vector<16x128xf32> to vector<16xf32>
    %13 = vector.shape_cast %12 : vector<16xf32> to vector<16x1xf32>
    %cst_4 = arith.constant 1.280000e+02 : f32
    %14 = vector.broadcast %cst_4 : f32 to vector<16x1xf32>
    %15 = arith.mulf %14, %11 : vector<16x1xf32>
    %16 = arith.subf %13, %15 : vector<16x1xf32>
    %17 = tpu.iota {dimensions = array<i32: 1>} : vector<16x128xi32>
    %c0_5 = arith.constant 0 : index
    %c0_6 = arith.constant 0 : index
    %18 = vector.load %arg2[%c0_5, %c0_6] : memref<16x1xi32, #tpu.memory_space<vmem>>, vector<16x1xi32>
    %19 = vector.broadcast %18 : vector<16x1xi32> to vector<16x128xi32>
    %20 = arith.cmpi eq, %17, %19 : vector<16x128xi32>
    %cst_7 = arith.constant 0.000000e+00 : f32
    %21 = vector.broadcast %cst_7 : f32 to vector<16x128xf32>
    %22 = arith.select %20, %7, %21 : vector<16x128xi1>, vector<16x128xf32>
    %cst_8 = arith.constant dense<0.000000e+00> : vector<16xf32>
    %23 = vector.multi_reduction <add>, %22, %cst_8 [1] : vector<16x128xf32> to vector<16xf32>
    %24 = vector.shape_cast %23 : vector<16xf32> to vector<16x1xf32>
    %25 = arith.subf %24, %11 : vector<16x1xf32>
    %cst_9 = arith.constant -7.812500e-04 : f32
    %26 = vector.broadcast %cst_9 : f32 to vector<16x1xf32>
    %27 = arith.mulf %26, %16 : vector<16x1xf32>
    %cst_10 = arith.constant 0.899999976 : f32
    %28 = vector.broadcast %cst_10 : f32 to vector<16x1xf32>
    %29 = arith.mulf %28, %25 : vector<16x1xf32>
    %30 = arith.subf %27, %29 : vector<16x1xf32>
    %c16_i32 = arith.constant 16 : i32
    %31 = arith.muli %arg0, %c16_i32 : i32
    %32 = tpu.iota {dimensions = array<i32: 0>} : vector<16x1xi32>
    %33 = vector.broadcast %31 : i32 to vector<16x1xi32>
    %34 = arith.addi %33, %32 : vector<16x1xi32>
    %c16_i32_11 = arith.constant 16 : i32
    %35 = vector.broadcast %c16_i32_11 : i32 to vector<16x1xi32>
    %36 = arith.cmpi slt, %34, %35 : vector<16x1xi32>
    %cst_12 = arith.constant 0.000000e+00 : f32
    %37 = vector.broadcast %cst_12 : f32 to vector<16x1xf32>
    %38 = arith.select %36, %30, %37 : vector<16x1xi1>, vector<16x1xf32>
    %c0_13 = arith.constant 0 : index
    %c0_14 = arith.constant 0 : index
    %39 = vector.load %arg4[%c0_13, %c0_14] : memref<1x1xf32, #tpu.memory_space<vmem>>, vector<1x1xf32>
    %cst_15 = arith.constant dense<0.000000e+00> : vector<1xf32>
    %40 = vector.multi_reduction <add>, %38, %cst_15 [0] : vector<16x1xf32> to vector<1xf32>
    %41 = vector.shape_cast %40 : vector<1xf32> to vector<1x1xf32>
    %42 = arith.addf %39, %41 : vector<1x1xf32>
    %c0_16 = arith.constant 0 : index
    %c0_17 = arith.constant 0 : index
    %43 = vector.load %arg4[%c0_16, %c0_17] : memref<1x1xf32, #tpu.memory_space<vmem>>, vector<1x1xf32>
    tpu.vector_store %arg4[%c0_16, %c0_17], %42 {strides = array<i32>} : memref<1x1xf32, #tpu.memory_space<vmem>>, vector<1x1xf32>,
    %c0_i32_18 = arith.constant 0 : i32
    %44 = arith.cmpi eq, %arg0, %c0_i32_18 : i32
    %45 = arith.extui %44 : i1 to i32
    %c0_i32_19 = arith.constant 0 : i32
    %46 = arith.cmpi ne, %45, %c0_i32_19 : i32
    scf.if %46 {
      %c0_20 = arith.constant 0 : index
      %c0_21 = arith.constant 0 : index
      %47 = vector.load %arg4[%c0_20, %c0_21] : memref<1x1xf32, #tpu.memory_space<vmem>>, vector<1x1xf32>
      %cst_22 = arith.constant 6.250000e-02 : f32
      %48 = vector.broadcast %cst_22 : f32 to vector<1x1xf32>
      %49 = arith.mulf %47, %48 : vector<1x1xf32>
      %c0_23 = arith.constant 0 : index
      %c0_24 = arith.constant 0 : index
      %50 = vector.load %arg3[%c0_23, %c0_24] : memref<1x1xf32, #tpu.memory_space<vmem>>, vector<1x1xf32>
      tpu.vector_store %arg3[%c0_23, %c0_24], %49 {strides = array<i32>} : memref<1x1xf32, #tpu.memory_space<vmem>>, vector<1x1xf32>,
    } else {
    }
    return
  }
  func.func @transform_0(%arg0: i32) -> (i32, i32) {
    %c0_i32 = arith.constant 0 : i32
    %c0_i32_0 = arith.constant 0 : i32
    return %arg0, %c0_i32 : i32, i32
  }
  func.func @transform_1(%arg0: i32) -> (i32, i32) {
    %c0_i32 = arith.constant 0 : i32
    %c0_i32_0 = arith.constant 0 : i32
    return %arg0, %c0_i32 : i32, i32
  }
  func.func @transform_2(%arg0: i32) -> (i32, i32) {
    %c0_i32 = arith.constant 0 : i32
    %c0_i32_0 = arith.constant 0 : i32
    %c0_i32_1 = arith.constant 0 : i32
    return %c0_i32, %c0_i32_0 : i32, i32
  }
}

</mosaic_0001>

<bundles_post_ra>
// kernel: tpu_custom_call.1
= control target key start
LH: loop header
LB: loop body
LE: loop exit
PB: predicated region body
PF: predicated region fallthrough
CT: control target
= control target key end

     0   :  { %v149_v2 = vmov 0   ;;  %s185_s0 = inlined_call_operand.vmem [shape: f32[16,128], index: 0, kind: input, shape index: {}]   ;;  %s186_s1 = inlined_call_operand.vmem [shape: s32[16,1], index: 1, kind: input, shape index: {}]   ;;  %s187_s2 = inlined_call_operand.hbm [shape: f32[1,1], index: 2, kind: output, shape index: {}]  }
   0x1   :  { %v18_v0 = vld [vmem:[%s185_s0] sm:$0xff]  ;;  %117 = vset.pattern.permute.xlu1 %v149_v2 }
   0x2   :  { %v48_v1 = vld [vmem:[%s186_s1] sm:$0xff]  ;;  %20 = vmax.xlane.f32.xlu0 %v18_v0 }
   0x3   :  { %7 = vsyncpa [#allocation4], 0  ;;  %v19_v3 = vld [vmem:[%s185_s0 + $0x8] sm:$0xff]  ;;  %51 = vperm.xlu1 %117, %v48_v1   ;;  %118 = vset.pattern.permute.xlu0 %v149_v2  ;;  %v46_v12 = vlaneseq  ;;  %vm16_vm2 = vcmask 0   ;;  %v150_v19 = vmov 0.0   ;;  %s151_s0 = smov [#allocation3]  }
   0x4   :  { %v49_v4 = vld [vmem:[%s186_s1 + $0x8] sm:$0xff]  ;;  %17 = vst.msk [vmem:[#allocation2] sm:$0x1] %vm16_vm2, %v150_v19  ;;  %s106_s1 = sshll.u32 %s151_s0, 4  ;;  %s107_s1 = int_to_ptr.vmem [resolvable:$true] %s106_s1 }
   0x5   :  { %v47_v15 = vand.u32 127, %v46_v12  ;;  %s127_s17 = scalar_lea.vmem %s107_s1, 16  ;;  %s131_s18 = scalar_lea.vmem %s107_s1, 32 }
   0x6   :  { %22 = vmax.xlane.f32.xlu0 %v19_v3  ;;  %p128_p0 = scmp.ne.s32.totalorder %s107_s1, %s127_s17  ;;  %p132_p1 = scmp.lt.s32.totalorder %s107_s1, %s107_s1 }
   0x7   :  { %54 = vperm.xlu1 %117, %v49_v4   ;;  %p133_p2 = scmp.lt.s32.totalorder %s131_s18, %s127_s17 }
   0x9   :  { %p134_p3 = por %p133_p2, %p132_p1 }
   0xb   :  { %v83_v48 = vld [vmem:[#allocation2] sm:$0x1]  ;;  %p135_p4 = pnand %p134_p3, %p128_p0 }
  0x7e   :  { %v52_v14 = vpop.permute.xlu1 %51 }
  0x7f   :  { %vm56_vm0 = vcmp.eq.s32.totalorder %v47_v15, %v52_v14 }
  0x82   :  { %v55_v16 = vpop.permute.xlu1 %54 }
  0x83   :  { %vm57_vm1 = vcmp.eq.s32.totalorder %v47_v15, %v55_v16 }
  0x8b   :  { %v21_v5 = vpop.xlane.xlu0 %20 }
  0x8c   :  { %v24_v6 = vsub.f32 %v18_v0, %v21_v5 }
  0x8e   :  { %v26_v7 = vmul.f32 1.442695, %v24_v6  ;;  %v58_v17 = vsel %vm56_vm0, %v24_v6, 0.0 }
  0x8f   :  { %v23_v8 = vpop.xlane.xlu0 %22 }
  0x90   :  { %119 = vpow2.f32 %v26_v7  ;;  %v25_v9 = vsub.f32 %v19_v3, %v23_v8 }
  0x92   :  { %v28_v10 = vmul.f32 1.442695, %v25_v9  ;;  %v59_v18 = vsel %vm57_vm1, %v25_v9, 0.0 }
  0x94   :  { %121 = vpow2.f32 %v28_v10 }
  0x9d   :  { %v120_v11 = vpop.eup %119 }
  0x9e   :  { %30 = vadd.xlane.f32.xlu0 %v120_v11 }
  0xa1   :  { %v122_v13 = vpop.eup %121 }
  0xa2   :  { %38 = vadd.xlane.f32.xlu0 %v24_v6  ;;  %32 = vadd.xlane.f32.xlu1 %v122_v13 }
  0xa6   :  { %40 = vadd.xlane.f32.xlu0 %v25_v9 }
  0xaa   :  { %60 = vadd.xlane.f32.xlu0 %v58_v17 }
  0xae   :  { %62 = vadd.xlane.f32.xlu0 %v59_v18 }
 0x127   :  { %v31_v20 = vpop.xlane.xlu0 %30 }
 0x128   :  { %123 = vlog2.f32 %v31_v20 }
 0x12b   :  { %v33_v21 = vpop.xlane.xlu1 %32  ;;  %v39_v22 = vpop.xlane.xlu0 %38 }
 0x12c   :  { %125 = vlog2.f32 %v33_v21 }
 0x12f   :  { %v41_v23 = vpop.xlane.xlu0 %40 }
 0x133   :  { %v61_v25 = vpop.xlane.xlu0 %60 }
 0x135   :  { %v124_v24 = vpop.eup %123 }
 0x136   :  { %v35_v26 = vmul.f32 0.6931472, %v124_v24 }
 0x137   :  { %v63_v31 = vpop.xlane.xlu0 %62 }
 0x138   :  { %v42_v27 = vmul.f32 128.0, %v35_v26  ;;  %v64_v33 = vsub.f32 %v61_v25, %v35_v26 }
 0x139   :  { %v126_v28 = vpop.eup %125 }
 0x13a   :  { %v37_v29 = vmul.f32 0.6931472, %v126_v28  ;;  %v44_v30 = vsub.f32 %v39_v22, %v42_v27  ;;  %v68_v38 = vmul.f32 0.9, %v64_v33 }
 0x13c   :  { %v43_v32 = vmul.f32 128.0, %v37_v29  ;;  %v65_v34 = vsub.f32 %v63_v31, %v37_v29  ;;  %v66_v35 = vmul.f32 -0.00078125, %v44_v30 }
 0x13e   :  { %v45_v36 = vsub.f32 %v41_v23, %v43_v32  ;;  %v69_v39 = vmul.f32 0.9, %v65_v34  ;;  %v70_v40 = vsub.f32 %v66_v35, %v68_v38 }
 0x140   :  { %v67_v37 = vmul.f32 -0.00078125, %v45_v36 }
 0x142   :  { %v71_v41 = vsub.f32 %v67_v37, %v69_v39 }
 0x144   :  { %v84_v42 = vadd.f32 %v71_v41, %v70_v40 }
 0x146   :  { %v85_v43 = vrot.slane %v84_v42, 4 }
 0x148   :  { %v86_v44 = vadd.f32 %v85_v43, %v84_v42 }
 0x14a   :  { %v87_v45 = vrot.slane %v86_v44, 2 }
 0x14c   :  { %v88_v46 = vadd.f32 %v87_v45, %v86_v44 }
 0x14e   :  { %v89_v47 = vrot.slane %v88_v46, 1 }
 0x150   :  { %v90_v49 = vadd.f32 %v89_v47, %v88_v46 }
 0x152   :  { %v91_v50 = vadd.f32 %v90_v49, %v83_v48 }
 0x154   :  { %93 = vst.msk [vmem:[#allocation2] sm:$0x1] %vm16_vm2, %v91_v50 }
 0x15b   :  { %v97_v51 = vld [vmem:[#allocation2] sm:$0x1] }
 0x15c   :  { %v98_v52 = vmul.f32 0.0625, %v97_v51 }
 0x15e   :  { %99 = vst.msk [vmem:[#allocation3] sm:$0x1] %vm16_vm2, %v98_v52 }
 0x15f   :  { %138 = shalt.err (!%p135_p4)
}
 0x160   :  { %109 = dma.vmem_to_hbm [thread:$0]  %s107_s1, 16, %s187_s2, [#allocation4]  }
 0x161   :  { %147 = dma.done.wait [#allocation4], 16  }
 0x162   :  { %148 = vsyncadd [#allocation4], 4294967280 }
 0x163   :  { %113 = vsyncpa [#allocation4], 1 }

</bundles_post_ra>
